<compile_context>
chip_gen: v6e
topology: v6e:2x2x1
jax: 0.10.0
libtpu: 0.0.40
codegen_flags: <defaults>
</compile_context>

<pallas_src>
import functools

import numpy as np
import jax
import jax.numpy as jnp
from jax.experimental import pallas as pl
from jax.experimental.pallas import tpu as pltpu

HX = 32        # hidden size (hx_size in the PyTorch module)
FEAT1 = 64     # first feature-layer width
_LANES = 128


def _round_up(x, m):
    return (x + m - 1) // m * m


def _qnet_kernel(obs_ref, hid_ref, p_ref, out_ref, *, g):
    """One batch tile, all agents: feature MLP -> GRUCell#1 -> GRUCell#2 -> Q."""
    A, OBS, F1 = g["A"], g["OBS"], g["F1"]
    GW, GP, QW = g["GW"], g["GP"], g["QW"]
    rw1, rw2 = g["r_w1"], g["r_w2"]
    ri1, ri2, rh2, rq, rb = (g["r_wih1"], g["r_wih2"], g["r_whh2"],
                             g["r_wq"], g["r_b"])

    x = obs_ref[...]        # (TB, A*OBS)
    h_in = hid_ref[...]     # (TB, GW)

    # ---- nn_feature: Linear(obs,64) -> ReLU -> Linear(64,32) -> ReLU -------
    x1 = jnp.dot(x, p_ref[rw1:rw1 + A * OBS, 0:A * F1],
                 preferred_element_type=jnp.float32)
    x1 = jnp.maximum(x1 + p_ref[rb + 0:rb + 1, 0:A * F1], 0.0)
    x2 = jnp.dot(x1, p_ref[rw2:rw2 + A * F1, 0:GW],
                 preferred_element_type=jnp.float32)
    x2 = jnp.maximum(x2 + p_ref[rb + 1:rb + 2, 0:GW], 0.0)

    # ---- GRUCell #1 (sits inside nn.Sequential -> its hidden state is zero,
    #      so only the input projection and the hidden biases contribute) ----
    gi1 = jnp.dot(x2, p_ref[ri1:ri1 + GW, 0:3 * GP],
                  preferred_element_type=jnp.float32)
    gi1 = gi1 + p_ref[rb + 2:rb + 3, 0:3 * GP]
    r1 = jax.nn.sigmoid(gi1[:, 0:GP])
    z1 = jax.nn.sigmoid(gi1[:, GP:2 * GP])
    n1 = jnp.tanh(gi1[:, 2 * GP:3 * GP] + r1 * p_ref[rb + 3:rb + 4, 0:GP])
    g1 = (1.0 - z1) * n1                      # (TB, GP); padding lanes are 0

    # ---- GRUCell #2 ----------------------------------------------------------
    gi2 = jnp.dot(g1, p_ref[ri2:ri2 + GP, 0:3 * GP],
                  preferred_element_type=jnp.float32)
    gi2 = gi2 + p_ref[rb + 4:rb + 5, 0:3 * GP]
    gh2 = jnp.dot(h_in, p_ref[rh2:rh2 + GW, 0:3 * GP],
                  preferred_element_type=jnp.float32)
    r2 = jax.nn.sigmoid(gi2[:, 0:GP] + gh2[:, 0:GP])
    z2 = jax.nn.sigmoid(gi2[:, GP:2 * GP] + gh2[:, GP:2 * GP])
    n2 = jnp.tanh(gi2[:, 2 * GP:3 * GP]
                  + r2 * (gh2[:, 2 * GP:3 * GP] + p_ref[rb + 5:rb + 6, 0:GP]))
    z2w = z2[:, 0:GW]
    h_new = (1.0 - z2w) * n2[:, 0:GW] + z2w * h_in        # (TB, GW)

    # ---- nn_q: Linear(HX, n_acts) --------------------------------------------
    q = jnp.dot(h_new, p_ref[rq:rq + GW, 0:QW],
                preferred_element_type=jnp.float32)
    q = q + p_ref[rb + 6:rb + 7, 0:QW]

    # Lane-dense packed output slab: h_new at lane 0, q at lane GP (128-aligned).
    out_ref[...] = jnp.zeros_like(out_ref)
    out_ref[:, 0:GW] = h_new
    out_ref[:, GP:GP + QW] = q


def pack_params(p):
    """One-time conversion: PyTorch-convention params -> single block-diag slab."""
    p = jax.tree_util.tree_map(np.asarray, p)
    A, F1, OBS = p["w1"].shape
    NA = p["wq"].shape[1]
    assert F1 == FEAT1 and p["w2"].shape[1] == HX

    GW = A * HX                       # per-gate width over all agents
    GP = _round_up(GW, _LANES)        # 128-aligned per-gate lane pitch
    QW = A * NA
    SLAB_N = _round_up(max(3 * GP, A * F1, QW), _LANES)

    # Row offsets inside the parameter slab (8-aligned sublane starts).
    r_w1 = 0
    r_w2 = _round_up(r_w1 + A * OBS, 8)
    r_wih1 = _round_up(r_w2 + A * F1, 8)
    r_wih2 = _round_up(r_wih1 + GW, 8)
    r_whh2 = _round_up(r_wih2 + GP, 8)
    r_wq = _round_up(r_whh2 + GW, 8)
    r_b = _round_up(r_wq + GW, 8)
    n_rows = _round_up(r_b + 7, 8)

    slab = np.zeros((n_rows, SLAB_N), np.float32)

    def put_block_diag(row0, w):            # w: (A, out, in) torch Linear layout
        n_out, n_in = w.shape[1], w.shape[2]
        for a in range(A):
            slab[row0 + a * n_in: row0 + (a + 1) * n_in,
                 a * n_out: (a + 1) * n_out] = w[a].T

    def put_gru_block_diag(row0, w):        # w: (A, 3*HX, in), torch gate order r,z,n
        n_in = w.shape[2]
        for a in range(A):
            for gate in range(3):
                slab[row0 + a * n_in: row0 + (a + 1) * n_in,
                     gate * GP + a * HX: gate * GP + (a + 1) * HX] = \
                    w[a, gate * HX:(gate + 1) * HX, :].T

    def gate_grouped(bias):                 # (A, 3*HX) -> (3*GP,) zero-padded
        out = np.zeros((3 * GP,), np.float32)
        for gate in range(3):
            out[gate * GP: gate * GP + GW] = \
                bias[:, gate * HX:(gate + 1) * HX].reshape(-1)
        return out

    put_block_diag(r_w1, p["w1"])
    put_block_diag(r_w2, p["w2"])
    put_gru_block_diag(r_wih1, p["wih1"])
    put_gru_block_diag(r_wih2, p["wih2"])
    put_gru_block_diag(r_whh2, p["whh2"])
    put_block_diag(r_wq, p["wq"])

    bih1, bhh1 = p["bih1"][:, 0, :], p["bhh1"][:, 0, :]
    bih2, bhh2 = p["bih2"][:, 0, :], p["bhh2"][:, 0, :]
    # r/z hidden biases fold into the input-side bias row; the n-gate hidden
    # bias stays separate because it sits inside r * (W_hn h + b_hn).
    gi1_bias = np.concatenate(
        [bih1[:, :2 * HX] + bhh1[:, :2 * HX], bih1[:, 2 * HX:]], axis=1)
    gi2_bias = np.concatenate(
        [bih2[:, :2 * HX] + bhh2[:, :2 * HX], bih2[:, 2 * HX:]], axis=1)

    slab[r_b + 0, 0:A * F1] = p["b1"][:, 0, :].reshape(-1)
    slab[r_b + 1, 0:GW] = p["b2"][:, 0, :].reshape(-1)
    slab[r_b + 2, 0:3 * GP] = gate_grouped(gi1_bias)
    slab[r_b + 3, 0:GW] = bhh1[:, 2 * HX:].reshape(-1)
    slab[r_b + 4, 0:3 * GP] = gate_grouped(gi2_bias)
    slab[r_b + 5, 0:GW] = bhh2[:, 2 * HX:].reshape(-1)
    slab[r_b + 6, 0:QW] = p["bq"][:, 0, :].reshape(-1)

    geom = dict(A=A, OBS=OBS, F1=F1, NA=NA, GW=GW, GP=GP, QW=QW,
                OUT_W=GP + _round_up(QW, _LANES),
                r_w1=r_w1, r_w2=r_w2, r_wih1=r_wih1, r_wih2=r_wih2,
                r_whh2=r_whh2, r_wq=r_wq, r_b=r_b)
    return {"slab": jnp.asarray(slab), "geom": geom}


def qnet_forward(obs, hidden, packed):
    """obs: (B, A, OBS), hidden: (B, A, HX) -> q: (B, A, n_acts), h: (B, A, HX)."""
    g = packed["geom"]
    B, A, OBS = obs.shape
    assert A == g["A"] and OBS == g["OBS"] and hidden.shape == (B, A, HX)

    # Contiguous reshapes only -- no HBM-side transposes.
    obs_f = obs.reshape(B, A * OBS).astype(jnp.float32)
    hid_f = hidden.reshape(B, g["GW"]).astype(jnp.float32)

    # Batch tiling: one tile for small B; 512-row tiles otherwise (params +
    # double-buffered tiles stay well under v7x's 64 MiB physical VMEM).
    TB = B if (B <= 512 or B % 512) else 512
    grid = (B // TB,)

    out = pl.pallas_call(
        functools.partial(_qnet_kernel, g=g),
        out_shape=jax.ShapeDtypeStruct((B, g["OUT_W"]), jnp.float32),
        grid=grid,
        in_specs=[
            pl.BlockSpec((TB, A * OBS), lambda i: (i, 0)),
            pl.BlockSpec((TB, g["GW"]), lambda i: (i, 0)),
            pl.BlockSpec(packed["slab"].shape, lambda i: (0, 0)),  # resident
        ],
        out_specs=pl.BlockSpec((TB, g["OUT_W"]), lambda i: (i, 0)),
        compiler_params=pltpu.CompilerParams(
            dimension_semantics=("parallel",)),  # v7x: 2 TCs split the batch
    )(obs_f, hid_f, packed["slab"])

    h_new = out[:, :g["GW"]].reshape(B, A, HX)
    q = out[:, g["GP"]:g["GP"] + g["QW"]].reshape(B, A, g["NA"])
    return q, h_new


def init_params(key, n_agents, obs_size, n_acts):
    """Deterministic synthetic parameters in the PyTorch Linear/GRUCell layout."""
    def uni(k, shape, fan_in):
        bound = 1.0 / jnp.sqrt(jnp.float32(fan_in))
        return jax.random.uniform(k, shape, jnp.float32, -bound, bound)

    keys = jax.random.split(key, 16)
    return {
        "w1":   uni(keys[0],  (n_agents, FEAT1, obs_size), obs_size),
        "b1":   uni(keys[1],  (n_agents, 1, FEAT1), obs_size),
        "w2":   uni(keys[2],  (n_agents, HX, FEAT1), FEAT1),
        "b2":   uni(keys[3],  (n_agents, 1, HX), FEAT1),
        "wih1": uni(keys[4],  (n_agents, 3 * HX, HX), HX),
        "bih1": uni(keys[5],  (n_agents, 1, 3 * HX), HX),
        "bhh1": uni(keys[6],  (n_agents, 1, 3 * HX), HX),
        # GRUCell #1 weight_hh multiplies a zero hidden state -> never used.
        "wih2": uni(keys[7],  (n_agents, 3 * HX, HX), HX),
        "whh2": uni(keys[8],  (n_agents, 3 * HX, HX), HX),
        "bih2": uni(keys[9],  (n_agents, 1, 3 * HX), HX),
        "bhh2": uni(keys[10], (n_agents, 1, 3 * HX), HX),
        "wq":   uni(keys[11], (n_agents, n_acts, HX), HX),
        "bq":   uni(keys[12], (n_agents, 1, n_acts), HX),
    }


def qnet_forward_ref(obs, hidden, params):
    """Pure-JAX reference using the raw PyTorch-convention params."""
    A = obs.shape[1]
    qs, hs = [], []
    for a in range(A):
        x = obs[:, a, :]
        h_in = hidden[:, a, :]
        x1 = jnp.maximum(x @ params["w1"][a].T + params["b1"][a], 0.0)
        x2 = jnp.maximum(x1 @ params["w2"][a].T + params["b2"][a], 0.0)
        gi = x2 @ params["wih1"][a].T + params["bih1"][a]
        bhh = params["bhh1"][a]
        r = jax.nn.sigmoid(gi[:, :HX] + bhh[:, :HX])
        z = jax.nn.sigmoid(gi[:, HX:2 * HX] + bhh[:, HX:2 * HX])
        n = jnp.tanh(gi[:, 2 * HX:] + r * bhh[:, 2 * HX:])
        g1 = (1.0 - z) * n
        gi2 = g1 @ params["wih2"][a].T + params["bih2"][a]
        gh2 = h_in @ params["whh2"][a].T + params["bhh2"][a]
        r2 = jax.nn.sigmoid(gi2[:, :HX] + gh2[:, :HX])
        z2 = jax.nn.sigmoid(gi2[:, HX:2 * HX] + gh2[:, HX:2 * HX])
        n2 = jnp.tanh(gi2[:, 2 * HX:] + r2 * gh2[:, 2 * HX:])
        h_new = (1.0 - z2) * n2 + z2 * h_in
        qs.append(h_new @ params["wq"][a].T + params["bq"][a])
        hs.append(h_new)
    return jnp.stack(qs, axis=1), jnp.stack(hs, axis=1)


if __name__ == "__main__":
    batch = 2
    n_agents = 3
    obs_size = 10
    n_acts = 5

    key = jax.random.PRNGKey(0)
    k_obs, k_hid, k_par = jax.random.split(key, 3)

    obs = jax.random.normal(k_obs, (batch, n_agents, obs_size), jnp.float32)
    hidden = jax.random.normal(k_hid, (batch, n_agents, HX), jnp.float32)
    params = init_params(k_par, n_agents, obs_size, n_acts)
    packed = pack_params(params)            # one-time parameter prep

    fwd = jax.jit(functools.partial(qnet_forward, packed=packed))
    q_values, next_hidden = fwd(obs, hidden)
    q_values = jax.block_until_ready(q_values)
    next_hidden = jax.block_until_ready(next_hidden)

    q_ref, h_ref = qnet_forward_ref(obs, hidden, params)
    assert q_values.shape == (batch, n_agents, n_acts)
    assert next_hidden.shape == (batch, n_agents, HX)
    assert jnp.allclose(q_values, q_ref, atol=1e-4, rtol=1e-4)
    assert jnp.allclose(next_hidden, h_ref, atol=1e-4, rtol=1e-4)

    print("KERNEL_OK")
</pallas_src>

<mosaic_0001>
module attributes {stable_mosaic.version = 11 : i64} {
  func.func @_qnet_kernel(%arg0: i32, %arg1: memref<2x30xf32, #tpu.memory_space<vmem>>, %arg2: memref<2x96xf32, #tpu.memory_space<vmem>>, %arg3: memref<648x384xf32, #tpu.memory_space<vmem>>, %arg4: memref<2x256xf32, #tpu.memory_space<vmem>>) attributes {dimension_semantics = [#tpu.dimension_semantics<parallel>], iteration_bounds = array<i64: 1>, scalar_prefetch = 0 : i64, scratch_operands = 0 : i64, tpu.core_type = #tpu.core_type<tc>, window_params = [{transform_indices = @transform_0, window_bounds = array<i64: 2, 30>}, {transform_indices = @transform_1, window_bounds = array<i64: 2, 96>}, {pipeline_mode = #tpu.pipeline_mode<synchronous>, transform_indices = @transform_2, window_bounds = array<i64: 648, 384>}, {transform_indices = @transform_3, window_bounds = array<i64: 2, 256>}]} {
    %c0 = arith.constant 0 : index
    %c0_0 = arith.constant 0 : index
    %0 = vector.load %arg1[%c0, %c0_0] : memref<2x30xf32, #tpu.memory_space<vmem>>, vector<2x30xf32>
    %c0_1 = arith.constant 0 : index
    %c0_2 = arith.constant 0 : index
    %1 = vector.load %arg2[%c0_1, %c0_2] : memref<2x96xf32, #tpu.memory_space<vmem>>, vector<2x96xf32>
    %c0_3 = arith.constant 0 : index
    %c0_4 = arith.constant 0 : index
    %2 = vector.load %arg3[%c0_3, %c0_4] : memref<648x384xf32, #tpu.memory_space<vmem>>, vector<30x192xf32>
    %cst = arith.constant dense<0.000000e+00> : vector<2x192xf32>
    %3 = tpu.matmul %0, %2, %cst {dimension_numbers = #tpu.dot_dimension_numbers<[1], [0], [0], [1], [0, 0, 1, 1], [], []>} : vector<2x30xf32>, vector<30x192xf32>, vector<2x192xf32> -> vector<2x192xf32>
    %c640 = arith.constant 640 : index
    %c0_5 = arith.constant 0 : index
    %4 = vector.load %arg3[%c640, %c0_5] : memref<648x384xf32, #tpu.memory_space<vmem>>, vector<1x192xf32>
    %5 = vector.broadcast %4 : vector<1x192xf32> to vector<2x192xf32>
    %6 = arith.addf %3, %5 : vector<2x192xf32>
    %cst_6 = arith.constant 0.000000e+00 : f32
    %7 = vector.broadcast %cst_6 : f32 to vector<2x192xf32>
    %8 = arith.maximumf %6, %7 : vector<2x192xf32>
    %c32 = arith.constant 32 : index
    %c0_7 = arith.constant 0 : index
    %9 = vector.load %arg3[%c32, %c0_7] : memref<648x384xf32, #tpu.memory_space<vmem>>, vector<192x96xf32>
    %cst_8 = arith.constant dense<0.000000e+00> : vector<2x96xf32>
    %10 = tpu.matmul %8, %9, %cst_8 {dimension_numbers = #tpu.dot_dimension_numbers<[1], [0], [0], [1], [0, 0, 1, 1], [], []>} : vector<2x192xf32>, vector<192x96xf32>, vector<2x96xf32> -> vector<2x96xf32>
    %c641 = arith.constant 641 : index
    %c0_9 = arith.constant 0 : index
    %11 = vector.load %arg3[%c641, %c0_9] : memref<648x384xf32, #tpu.memory_space<vmem>>, vector<1x96xf32>
    %12 = vector.broadcast %11 : vector<1x96xf32> to vector<2x96xf32>
    %13 = arith.addf %10, %12 : vector<2x96xf32>
    %cst_10 = arith.constant 0.000000e+00 : f32
    %14 = vector.broadcast %cst_10 : f32 to vector<2x96xf32>
    %15 = arith.maximumf %13, %14 : vector<2x96xf32>
    %c224 = arith.constant 224 : index
    %c0_11 = arith.constant 0 : index
    %16 = vector.load %arg3[%c224, %c0_11] : memref<648x384xf32, #tpu.memory_space<vmem>>, vector<96x384xf32>
    %cst_12 = arith.constant dense<0.000000e+00> : vector<2x384xf32>
    %17 = tpu.matmul %15, %16, %cst_12 {dimension_numbers = #tpu.dot_dimension_numbers<[1], [0], [0], [1], [0, 0, 1, 1], [], []>} : vector<2x96xf32>, vector<96x384xf32>, vector<2x384xf32> -> vector<2x384xf32>
    %c642 = arith.constant 642 : index
    %c0_13 = arith.constant 0 : index
    %18 = vector.load %arg3[%c642, %c0_13] : memref<648x384xf32, #tpu.memory_space<vmem>>, vector<1x384xf32>
    %19 = vector.broadcast %18 : vector<1x384xf32> to vector<2x384xf32>
    %20 = arith.addf %17, %19 : vector<2x384xf32>
    %21 = vector.extract_strided_slice %20 {offsets = [0, 0], sizes = [2, 128], strides = [1, 1]} : vector<2x384xf32> to vector<2x128xf32>
    %22 = arith.negf %21 : vector<2x128xf32>
    %23 = math.exp %22 : vector<2x128xf32>
    %cst_14 = arith.constant 1.000000e+00 : f32
    %24 = vector.broadcast %cst_14 : f32 to vector<2x128xf32>
    %25 = arith.addf %24, %23 : vector<2x128xf32>
    %26 = arith.divf %24, %25 : vector<2x128xf32>
    %27 = vector.extract_strided_slice %20 {offsets = [0, 128], sizes = [2, 128], strides = [1, 1]} : vector<2x384xf32> to vector<2x128xf32>
    %28 = arith.negf %27 : vector<2x128xf32>
    %29 = math.exp %28 : vector<2x128xf32>
    %cst_15 = arith.constant 1.000000e+00 : f32
    %30 = vector.broadcast %cst_15 : f32 to vector<2x128xf32>
    %31 = arith.addf %30, %29 : vector<2x128xf32>
    %32 = arith.divf %30, %31 : vector<2x128xf32>
    %33 = vector.extract_strided_slice %20 {offsets = [0, 256], sizes = [2, 128], strides = [1, 1]} : vector<2x384xf32> to vector<2x128xf32>
    %c643 = arith.constant 643 : index
    %c0_16 = arith.constant 0 : index
    %34 = vector.load %arg3[%c643, %c0_16] : memref<648x384xf32, #tpu.memory_space<vmem>>, vector<1x128xf32>
    %35 = vector.broadcast %34 : vector<1x128xf32> to vector<2x128xf32>
    %36 = arith.mulf %26, %35 : vector<2x128xf32>
    %37 = arith.addf %33, %36 : vector<2x128xf32>
    %38 = math.tanh %37 : vector<2x128xf32>
    %cst_17 = arith.constant 1.000000e+00 : f32
    %39 = vector.broadcast %cst_17 : f32 to vector<2x128xf32>
    %40 = arith.subf %39, %32 : vector<2x128xf32>
    %41 = arith.mulf %40, %38 : vector<2x128xf32>
    %c320 = arith.constant 320 : index
    %c0_18 = arith.constant 0 : index
    %42 = vector.load %arg3[%c320, %c0_18] : memref<648x384xf32, #tpu.memory_space<vmem>>, vector<128x384xf32>
    %cst_19 = arith.constant dense<0.000000e+00> : vector<2x384xf32>
    %43 = tpu.matmul %41, %42, %cst_19 {dimension_numbers = #tpu.dot_dimension_numbers<[1], [0], [0], [1], [0, 0, 1, 1], [], []>} : vector<2x128xf32>, vector<128x384xf32>, vector<2x384xf32> -> vector<2x384xf32>
    %c644 = arith.constant 644 : index
    %c0_20 = arith.constant 0 : index
    %44 = vector.load %arg3[%c644, %c0_20] : memref<648x384xf32, #tpu.memory_space<vmem>>, vector<1x384xf32>
    %45 = vector.broadcast %44 : vector<1x384xf32> to vector<2x384xf32>
    %46 = arith.addf %43, %45 : vector<2x384xf32>
    %c448 = arith.constant 448 : index
    %c0_21 = arith.constant 0 : index
    %47 = vector.load %arg3[%c448, %c0_21] : memref<648x384xf32, #tpu.memory_space<vmem>>, vector<96x384xf32>
    %cst_22 = arith.constant dense<0.000000e+00> : vector<2x384xf32>
    %48 = tpu.matmul %1, %47, %cst_22 {dimension_numbers = #tpu.dot_dimension_numbers<[1], [0], [0], [1], [0, 0, 1, 1], [], []>} : vector<2x96xf32>, vector<96x384xf32>, vector<2x384xf32> -> vector<2x384xf32>
    %49 = vector.extract_strided_slice %46 {offsets = [0, 0], sizes = [2, 128], strides = [1, 1]} : vector<2x384xf32> to vector<2x128xf32>
    %50 = vector.extract_strided_slice %48 {offsets = [0, 0], sizes = [2, 128], strides = [1, 1]} : vector<2x384xf32> to vector<2x128xf32>
    %51 = arith.addf %49, %50 : vector<2x128xf32>
    %52 = arith.negf %51 : vector<2x128xf32>
    %53 = math.exp %52 : vector<2x128xf32>
    %cst_23 = arith.constant 1.000000e+00 : f32
    %54 = vector.broadcast %cst_23 : f32 to vector<2x128xf32>
    %55 = arith.addf %54, %53 : vector<2x128xf32>
    %56 = arith.divf %54, %55 : vector<2x128xf32>
    %57 = vector.extract_strided_slice %46 {offsets = [0, 128], sizes = [2, 128], strides = [1, 1]} : vector<2x384xf32> to vector<2x128xf32>
    %58 = vector.extract_strided_slice %48 {offsets = [0, 128], sizes = [2, 128], strides = [1, 1]} : vector<2x384xf32> to vector<2x128xf32>
    %59 = arith.addf %57, %58 : vector<2x128xf32>
    %60 = arith.negf %59 : vector<2x128xf32>
    %61 = math.exp %60 : vector<2x128xf32>
    %cst_24 = arith.constant 1.000000e+00 : f32
    %62 = vector.broadcast %cst_24 : f32 to vector<2x128xf32>
    %63 = arith.addf %62, %61 : vector<2x128xf32>
    %64 = arith.divf %62, %63 : vector<2x128xf32>
    %65 = vector.extract_strided_slice %46 {offsets = [0, 256], sizes = [2, 128], strides = [1, 1]} : vector<2x384xf32> to vector<2x128xf32>
    %66 = vector.extract_strided_slice %48 {offsets = [0, 256], sizes = [2, 128], strides = [1, 1]} : vector<2x384xf32> to vector<2x128xf32>
    %c645 = arith.constant 645 : index
    %c0_25 = arith.constant 0 : index
    %67 = vector.load %arg3[%c645, %c0_25] : memref<648x384xf32, #tpu.memory_space<vmem>>, vector<1x128xf32>
    %68 = vector.broadcast %67 : vector<1x128xf32> to vector<2x128xf32>
    %69 = arith.addf %66, %68 : vector<2x128xf32>
    %70 = arith.mulf %56, %69 : vector<2x128xf32>
    %71 = arith.addf %65, %70 : vector<2x128xf32>
    %72 = math.tanh %71 : vector<2x128xf32>
    %73 = vector.extract_strided_slice %64 {offsets = [0, 0], sizes = [2, 96], strides = [1, 1]} : vector<2x128xf32> to vector<2x96xf32>
    %cst_26 = arith.constant 1.000000e+00 : f32
    %74 = vector.broadcast %cst_26 : f32 to vector<2x96xf32>
    %75 = arith.subf %74, %73 : vector<2x96xf32>
    %76 = vector.extract_strided_slice %72 {offsets = [0, 0], sizes = [2, 96], strides = [1, 1]} : vector<2x128xf32> to vector<2x96xf32>
    %77 = arith.mulf %75, %76 : vector<2x96xf32>
    %78 = arith.mulf %73, %1 : vector<2x96xf32>
    %79 = arith.addf %77, %78 : vector<2x96xf32>
    %c544 = arith.constant 544 : index
    %c0_27 = arith.constant 0 : index
    %80 = vector.load %arg3[%c544, %c0_27] : memref<648x384xf32, #tpu.memory_space<vmem>>, vector<96x15xf32>
    %cst_28 = arith.constant dense<0.000000e+00> : vector<2x15xf32>
    %81 = tpu.matmul %79, %80, %cst_28 {dimension_numbers = #tpu.dot_dimension_numbers<[1], [0], [0], [1], [0, 0, 1, 1], [], []>} : vector<2x96xf32>, vector<96x15xf32>, vector<2x15xf32> -> vector<2x15xf32>
    %c646 = arith.constant 646 : index
    %c0_29 = arith.constant 0 : index
    %82 = vector.load %arg3[%c646, %c0_29] : memref<648x384xf32, #tpu.memory_space<vmem>>, vector<1x15xf32>
    %83 = vector.broadcast %82 : vector<1x15xf32> to vector<2x15xf32>
    %84 = arith.addf %81, %83 : vector<2x15xf32>
    %cst_30 = arith.constant 0.000000e+00 : f32
    %85 = vector.broadcast %cst_30 : f32 to vector<2x256xf32>
    %c0_31 = arith.constant 0 : index
    %c0_32 = arith.constant 0 : index
    %86 = vector.load %arg4[%c0_31, %c0_32] : memref<2x256xf32, #tpu.memory_space<vmem>>, vector<2x256xf32>
    tpu.vector_store %arg4[%c0_31, %c0_32], %85 {strides = array<i32>} : memref<2x256xf32, #tpu.memory_space<vmem>>, vector<2x256xf32>,
    %c0_33 = arith.constant 0 : index
    %c0_34 = arith.constant 0 : index
    %87 = vector.load %arg4[%c0_33, %c0_34] : memref<2x256xf32, #tpu.memory_space<vmem>>, vector<2x96xf32>
    tpu.vector_store %arg4[%c0_33, %c0_34], %79 {strides = array<i32>} : memref<2x256xf32, #tpu.memory_space<vmem>>, vector<2x96xf32>,
    %c0_35 = arith.constant 0 : index
    %c128 = arith.constant 128 : index
    %88 = vector.load %arg4[%c0_35, %c128] : memref<2x256xf32, #tpu.memory_space<vmem>>, vector<2x15xf32>
    tpu.vector_store %arg4[%c0_35, %c128], %84 {strides = array<i32>} : memref<2x256xf32, #tpu.memory_space<vmem>>, vector<2x15xf32>,
    return
  }
  func.func @transform_0(%arg0: i32) -> (i32, i32) {
    %c0_i32 = arith.constant 0 : i32
    %c0_i32_0 = arith.constant 0 : i32
    return %arg0, %c0_i32 : i32, i32
  }
  func.func @transform_1(%arg0: i32) -> (i32, i32) {
    %c0_i32 = arith.constant 0 : i32
    %c0_i32_0 = arith.constant 0 : i32
    return %arg0, %c0_i32 : i32, i32
  }
  func.func @transform_2(%arg0: i32) -> (i32, i32) {
    %c0_i32 = arith.constant 0 : i32
    %c0_i32_0 = arith.constant 0 : i32
    %c0_i32_1 = arith.constant 0 : i32
    return %c0_i32, %c0_i32_0 : i32, i32
  }
  func.func @transform_3(%arg0: i32) -> (i32, i32) {
    %c0_i32 = arith.constant 0 : i32
    %c0_i32_0 = arith.constant 0 : i32
    return %arg0, %c0_i32 : i32, i32
  }
}

</mosaic_0001>

<bundles_post_ra>
// kernel: qnet_forward.1
= control target key start
LH: loop header
LB: loop body
LE: loop exit
PB: predicated region body
PF: predicated region fallthrough
CT: control target
= control target key end

     0   :  { %8 = vsyncpa [#allocation3], 0  ;;  %s1190_s12 = smov [#allocation2]   ;;  %s1351_s0 = inlined_call_operand.vmem [shape: f32[2,30], index: 0, kind: input, shape index: {}]   ;;  %s1352_s1 = inlined_call_operand.vmem [shape: f32[2,96], index: 1, kind: input, shape index: {}]   ;;  %s1353_s2 = inlined_call_operand.hbm [shape: f32[648,384], index: 2, kind: input, shape index: {}]   ;;  %s1354_s3 = inlined_call_operand.vmem [shape: f32[2,256], index: 3, kind: output, shape index: {}]  }
   0x1   :  { %s18_s13 = sshll.u32 %s1190_s12, 4  ;;  %s19_s13 = int_to_ptr.vmem [resolvable:$true] %s18_s13 }
   0x2   :  { %s1176_s14 = scalar_lea.vmem %s19_s13, 31104  ;;  %p1181_p1 = scmp.lt.s32.totalorder %s19_s13, %s19_s13 }
   0x3   :  { %p1177_p0 = scmp.ne.s32.totalorder %s19_s13, %s1176_s14  ;;  %p1182_p2 = scmp.lt.s32.totalorder %s1176_s14, %s1176_s14 }
   0x5   :  { %p1183_p3 = por %p1182_p2, %p1181_p1 }
   0x7   :  { %p1184_p4 = pnand %p1183_p3, %p1177_p0 }
   0x9   :  { %1187 = shalt.err (!%p1184_p4)
}
   0xa   :  { %s1191_s15 = smov 384   ;;  %s1192_s16 = smov 24  }
   0xb   :  { %24 = dma.hbm_to_vmem [thread:$0]  %s1353_s2, 31104, %s19_s13, [#allocation3], %s1191_s15, %s1191_s15, %s1192_s16  }
   0xc   :  { %1188 = dma.done.wait [#allocation3], 31104  }
   0xd   :  { %1189 = vsyncadd [#allocation3], 4294936192  ;;  %v1193_v0 = vmov 0.0   ;;  %vm55_vm0 = vcmask 1045504   ;;  %v37_v1 = vld [vmem:[#allocation2 + $0x50] sm:$0x3f]  ;;  %v41_v54 = vlaneseq }
   0xe   :  { %126 = vmatprep.mubr.f32.mxu0 %v1193_v0  ;;  %948 = vst [vmem:[%s1354_s3] sm:$0xf] %v1193_v0  ;;  %164 = vmatprep.subr.mxu1 %v1193_v0  ;;  %v36_v2 = vld [vmem:[#allocation2 + $0x48] sm:$0x3f]  ;;  %v35_v3 = vld [vmem:[#allocation2 + $0x38] sm:$0xff]  ;;  %v34_v4 = vld [vmem:[#allocation2 + $0x30] sm:$0xff]  ;;  %vm51_vm1 = vcmask 244736  }
   0xf   :  { %958 = vmatprep.subr.msk.mxu0 %vm55_vm0, %v37_v1  ;;  %v33_v5 = vld [vmem:[#allocation2 + $0x20] sm:$0xff]  ;;  %v32_v6 = vld [vmem:[#allocation2 + $0x18] sm:$0xff]  ;;  %v150_v7 = vld [vmem:[#allocation2 + $0x1c8] sm:$0xff]  ;;  %v1251_v55 = vshrl.u32 %v41_v54, 7  ;;  %vm160_vm2 = vcmask 523264   ;;  %vm289_vm3 = vcmask 785408  }
  0x10   :  { %959 = vmatpush1.msk.msra.mxu0 %vm55_vm0, %v36_v2  ;;  %v149_v8 = vld [vmem:[#allocation2 + $0x1b0] sm:$0xff]  ;;  %v31_v9 = vld [vmem:[#allocation2 + $0x8] sm:$0xff]  ;;  %165 = vmatpush1.msra.mxu1 %v150_v7  ;;  %v30_v10 = vld [vmem:[#allocation2] sm:$0xff]  ;;  %vm1194_vm4 = vmmov 0   ;;  %vm949_vm5 = vcmask 779264   ;;  %vm951_vm6 = vcmask 115712  }
  0x11   :  { %88 = vmatprep.subr.mxu0 %v35_v3  ;;  %166 = vmatprep.subr.mxu1 %v1193_v0  ;;  %v148_v11 = vld [vmem:[#allocation2 + $0x198] sm:$0xff]  ;;  %v28_v12 = vld [vmem:[%s1351_s0] sm:$0x3]  ;;  %v146_v14 = vld [vmem:[#allocation2 + $0x168] sm:$0xff]  ;;  %v1254_v56 = vsub.s32 0, %v1251_v55  ;;  %v1257_v58 = vsub.s32 1, %v1251_v55 }
  0x12   :  { %89 = vmatpush1.msra.mxu0 %v34_v4  ;;  %167 = vmatpush1.msra.mxu1 %v149_v8  ;;  %v147_v13 = vld [vmem:[#allocation2 + $0x180] sm:$0xff]  ;;  %v145_v15 = vld [vmem:[#allocation2 + $0x150] sm:$0xff]  ;;  %v144_v16 = vld [vmem:[#allocation2 + $0x138] sm:$0xff] }
  0x13   :  { %90 = vmatprep.subr.mxu0 %v33_v5  ;;  %168 = vmatprep.subr.mxu1 %v1193_v0  ;;  %v143_v17 = vld [vmem:[#allocation2 + $0x120] sm:$0xff]  ;;  %v142_v18 = vld [vmem:[#allocation2 + $0x108] sm:$0xff]  ;;  %v141_v19 = vld [vmem:[#allocation2 + $0xf0] sm:$0xff] }
  0x14   :  { %91 = vmatpush1.msra.mxu0 %v32_v6  ;;  %169 = vmatpush1.msra.mxu1 %v148_v11  ;;  %v140_v20 = vld [vmem:[#allocation2 + $0xd8] sm:$0xff]  ;;  %v139_v21 = vld [vmem:[#allocation2 + $0xc0] sm:$0xff]  ;;  %v138_v22 = vld [vmem:[#allocation2 + $0xa8] sm:$0xff] }
  0x15   :  { %92 = vmatprep.subr.mxu0 %v31_v9  ;;  %170 = vmatprep.subr.mxu1 %v1193_v0  ;;  %v137_v23 = vld [vmem:[#allocation2 + $0x90] sm:$0xff]  ;;  %v136_v24 = vld [vmem:[#allocation2 + $0x78] sm:$0xff]  ;;  %v135_v25 = vld [vmem:[#allocation2 + $0x60] sm:$0xff] }
  0x16   :  { %93 = vmatpush1.msra.mxu0 %v30_v10  ;;  %171 = vmatpush1.msra.mxu1 %v147_v13  ;;  %v158_v26 = vld [vmem:[#allocation2 + $0x288] sm:$0xff]  ;;  %v157_v27 = vld [vmem:[#allocation2 + $0x270] sm:$0xff]  ;;  %v156_v28 = vld [vmem:[#allocation2 + $0x258] sm:$0xff] }
  0x17   :  { %960 = vmatmul.mubr.msk.f32.vlgmr.msra.gmra.mxu0 %vm51_vm1, %v28_v12  ;;  %172 = vmatprep.subr.mxu1 %v1193_v0  ;;  %v155_v29 = vld [vmem:[#allocation2 + $0x240] sm:$0xff]  ;;  %v154_v30 = vld [vmem:[#allocation2 + $0x228] sm:$0xff]  ;;  %v153_v31 = vld [vmem:[#allocation2 + $0x210] sm:$0xff] }
  0x18   :  { %357 = vmatprep.mubr.f32.mxu0 %v1193_v0  ;;  %173 = vmatpush1.msra.mxu1 %v146_v14  ;;  %v152_v32 = vld [vmem:[#allocation2 + $0x1f8] sm:$0xff]  ;;  %v151_v33 = vld [vmem:[#allocation2 + $0x1e0] sm:$0xff]  ;;  %v269_v34 = vld [vmem:[#allocation2 + $0x3b0] sm:$0xff] }
  0x19   :  { %174 = vmatprep.subr.mxu1 %v1193_v0  ;;  %v268_v35 = vld [vmem:[#allocation2 + $0x3a8] sm:$0xff]  ;;  %v266_v36 = vld [vmem:[#allocation2 + $0x398] sm:$0xff]  ;;  %301 = vmatprep.subr.mxu0 %v269_v34  ;;  %v265_v37 = vld [vmem:[#allocation2 + $0x390] sm:$0xff] }
  0x1a   :  { %175 = vmatpush1.msra.mxu1 %v145_v15  ;;  %302 = vmatpush1.msra.mxu0 %v268_v35  ;;  %v263_v38 = vld [vmem:[#allocation2 + $0x380] sm:$0xff]  ;;  %v262_v39 = vld [vmem:[#allocation2 + $0x378] sm:$0xff]  ;;  %v260_v40 = vld [vmem:[#allocation2 + $0x368] sm:$0xff] }
  0x1b   :  { %176 = vmatprep.subr.mxu1 %v1193_v0  ;;  %303 = vmatprep.subr.mxu0 %v266_v36  ;;  %v259_v41 = vld [vmem:[#allocation2 + $0x360] sm:$0xff]  ;;  %v257_v42 = vld [vmem:[#allocation2 + $0x350] sm:$0xff]  ;;  %v256_v43 = vld [vmem:[#allocation2 + $0x348] sm:$0xff] }
  0x1c   :  { %177 = vmatpush1.msra.mxu1 %v144_v16  ;;  %304 = vmatpush1.msra.mxu0 %v265_v37  ;;  %v254_v44 = vld [vmem:[#allocation2 + $0x338] sm:$0xff]  ;;  %v253_v45 = vld [vmem:[#allocation2 + $0x330] sm:$0xff]  ;;  %v251_v46 = vld [vmem:[#allocation2 + $0x320] sm:$0xff] }
  0x1d   :  { %178 = vmatprep.subr.mxu1 %v1193_v0  ;;  %305 = vmatprep.subr.mxu0 %v263_v38  ;;  %v250_v47 = vld [vmem:[#allocation2 + $0x318] sm:$0xff]  ;;  %v248_v48 = vld [vmem:[#allocation2 + $0x308] sm:$0xff]  ;;  %v247_v49 = vld [vmem:[#allocation2 + $0x300] sm:$0xff] }
  0x1e   :  { %179 = vmatpush1.msra.mxu1 %v143_v17  ;;  %306 = vmatpush1.msra.mxu0 %v262_v39  ;;  %v245_v50 = vld [vmem:[#allocation2 + $0x2f0] sm:$0xff]  ;;  %v244_v51 = vld [vmem:[#allocation2 + $0x2e8] sm:$0xff]  ;;  %v242_v52 = vld [vmem:[#allocation2 + $0x2d8] sm:$0xff] }
  0x1f   :  { %180 = vmatprep.subr.mxu1 %v1193_v0  ;;  %307 = vmatprep.subr.mxu0 %v260_v40  ;;  %v241_v53 = vld [vmem:[#allocation2 + $0x2d0] sm:$0xff]  ;;  %v39_v57 = vld [vmem:[#allocation2 + $0x780] ss:$8 sm:$0x3]  ;;  %v238_v5 = vld [vmem:[#allocation2 + $0x2b8] sm:$0xff] }
  0x20   :  { %181 = vmatpush1.msra.mxu1 %v142_v18  ;;  %308 = vmatpush1.msra.mxu0 %v259_v41  ;;  %v44_v59 = vrot.slane %v39_v57, %v1254_v56  ;;  %v48_v60 = vrot.slane %v39_v57, %v1257_v58  ;;  %v239_v4 = vld [vmem:[#allocation2 + $0x2c0] sm:$0xff]  ;;  %v236_v6 = vld [vmem:[#allocation2 + $0x2a8] sm:$0xff]  ;;  %v270_v13 = vld [vmem:[#allocation2 + $0x3b8] sm:$0xff] }
  0x21   :  { %182 = vmatprep.subr.mxu1 %v1193_v0  ;;  %309 = vmatprep.subr.mxu0 %v257_v42  ;;  %v235_v7 = vld [vmem:[#allocation2 + $0x2a0] sm:$0xff]  ;;  %v264_v15 = vld [vmem:[#allocation2 + $0x388] sm:$0xff]  ;;  %v261_v16 = vld [vmem:[#allocation2 + $0x370] sm:$0xff] }
  0x22   :  { %183 = vmatpush1.msra.mxu1 %v141_v19  ;;  %310 = vmatpush1.msra.mxu0 %v256_v43  ;;  %v159_v8 = vld [vmem:[#allocation2 + $0x781] ss:$0 sm:$0xff]  ;;  %v258_v17 = vld [vmem:[#allocation2 + $0x358] sm:$0xff]  ;;  %v252_v19 = vld [vmem:[#allocation2 + $0x328] sm:$0xff] }
  0x23   :  { %184 = vmatprep.subr.mxu1 %v1193_v0  ;;  %311 = vmatprep.subr.mxu0 %v254_v44  ;;  %v267_v14 = vld [vmem:[#allocation2 + $0x3a0] sm:$0xff]  ;;  %v493_v34 = vld [vmem:[#allocation2 + $0x508] sm:$0xff]  ;;  %v486_v36 = vld [vmem:[#allocation2 + $0x4d0] sm:$0xff] }
  0x24   :  { %185 = vmatpush1.msra.mxu1 %v140_v20  ;;  %312 = vmatpush1.msra.mxu0 %v253_v45  ;;  %v255_v18 = vld [vmem:[#allocation2 + $0x340] sm:$0xff]  ;;  %v249_v20 = vld [vmem:[#allocation2 + $0x310] sm:$0xff]  ;;  %v485_v38 = vld [vmem:[#allocation2 + $0x4c8] sm:$0xff] }
  0x25   :  { %186 = vmatprep.subr.mxu1 %v1193_v0  ;;  %313 = vmatprep.subr.mxu0 %v251_v46  ;;  %v488_v35 = vld [vmem:[#allocation2 + $0x4e0] sm:$0xff]  ;;  %v490_v37 = vld [vmem:[#allocation2 + $0x4f0] sm:$0xff]  ;;  %v483_v39 = vld [vmem:[#allocation2 + $0x4b8] sm:$0xff] }
  0x26   :  { %187 = vmatpush1.msra.mxu1 %v139_v21  ;;  %314 = vmatpush1.msra.mxu0 %v250_v47  ;;  %v246_v21 = vld [vmem:[#allocation2 + $0x2f8] sm:$0xff]  ;;  %v482_v41 = vld [vmem:[#allocation2 + $0x4b0] sm:$0xff]  ;;  %v480_v42 = vld [vmem:[#allocation2 + $0x4a0] sm:$0xff] }
  0x27   :  { %188 = vmatprep.subr.mxu1 %v1193_v0  ;;  %315 = vmatprep.subr.mxu0 %v248_v48  ;;  %v487_v40 = vld [vmem:[#allocation2 + $0x4d8] sm:$0xff]  ;;  %v484_v43 = vld [vmem:[#allocation2 + $0x4c0] sm:$0xff]  ;;  %v477_v45 = vld [vmem:[#allocation2 + $0x488] sm:$0xff] }
  0x28   :  { %189 = vmatpush1.msra.mxu1 %v138_v22  ;;  %316 = vmatpush1.msra.mxu0 %v247_v49  ;;  %v243_v22 = vld [vmem:[#allocation2 + $0x2e0] sm:$0xff]  ;;  %v479_v44 = vld [vmem:[#allocation2 + $0x498] sm:$0xff]  ;;  %v481_v46 = vld [vmem:[#allocation2 + $0x4a8] sm:$0xff] }
  0x29   :  { %190 = vmatprep.subr.mxu1 %v1193_v0  ;;  %317 = vmatprep.subr.mxu0 %v245_v50  ;;  %v476_v47 = vld [vmem:[#allocation2 + $0x480] sm:$0xff]  ;;  %v474_v48 = vld [vmem:[#allocation2 + $0x470] sm:$0xff]  ;;  %v473_v50 = vld [vmem:[#allocation2 + $0x468] sm:$0xff] }
  0x2a   :  { %191 = vmatpush1.msra.mxu1 %v137_v23  ;;  %318 = vmatpush1.msra.mxu0 %v244_v51  ;;  %v240_v23 = vld [vmem:[#allocation2 + $0x2c8] sm:$0xff]  ;;  %v478_v49 = vld [vmem:[#allocation2 + $0x490] sm:$0xff]  ;;  %v471_v51 = vld [vmem:[#allocation2 + $0x458] sm:$0xff] }
  0x2b   :  { %192 = vmatprep.subr.mxu1 %v1193_v0  ;;  %319 = vmatprep.subr.mxu0 %v242_v52  ;;  %v475_v52 = vld [vmem:[#allocation2 + $0x478] sm:$0xff]  ;;  %v468_v54 = vld [vmem:[#allocation2 + $0x440] sm:$0xff] }
  0x2c   :  { %193 = vmatpush1.msra.mxu1 %v136_v24  ;;  %320 = vmatpush1.msra.mxu0 %v241_v53  ;;  %v237_v24 = vld [vmem:[#allocation2 + $0x2b0] sm:$0xff]  ;;  %v472_v57 = vld [vmem:[#allocation2 + $0x460] sm:$0xff] }
  0x2d   :  { %194 = vmatprep.subr.mxu1 %v1193_v0  ;;  %321 = vmatprep.subr.mxu0 %v239_v4  ;;  %v470_v53 = vld [vmem:[#allocation2 + $0x450] sm:$0xff]  ;;  %v463_v4 = vld [vmem:[#allocation2 + $0x418] sm:$0xff] }
  0x2e   :  { %195 = vmatpush1.msra.mxu1 %v135_v25  ;;  %322 = vmatpush1.msra.mxu0 %v238_v5  ;;  %v498_v25 = vld [vmem:[#allocation2 + $0x530] sm:$0xff] }
  0x2f   :  { %212 = vmatprep.subr.mxu1 %v1193_v0  ;;  %323 = vmatprep.subr.mxu0 %v236_v6  ;;  %v458_v5 = vld [vmem:[#allocation2 + $0x3f0] sm:$0xff]  ;;  %v456_v6 = vld [vmem:[#allocation2 + $0x3e0] sm:$0xff] }
  0x30   :  { %213 = vmatpush2.msra.mxu1 %v158_v26  ;;  %324 = vmatpush1.msra.mxu0 %v235_v7  ;;  %v497_v26 = vld [vmem:[#allocation2 + $0x528] sm:$0xff]  ;;  %v460_v7 = vld [vmem:[#allocation2 + $0x400] sm:$0xff] }
  0x31   :  { %214 = vmatprep.subr.mxu1 %v1193_v0  ;;  %1027 = vmatprep.subr.mxu0 %v1193_v0 }
  0x32   :  { %215 = vmatpush2.msra.mxu1 %v157_v27  ;;  %v495_v27 = vld [vmem:[#allocation2 + $0x518] sm:$0xff] }
  0x33   :  { %216 = vmatprep.subr.mxu1 %v1193_v0 }
  0x34   :  { %217 = vmatpush2.msra.mxu1 %v156_v28  ;;  %v499_v28 = vld [vmem:[#allocation2 + $0x538] sm:$0xff] }
  0x35   :  { %218 = vmatprep.subr.mxu1 %v1193_v0 }
  0x36   :  { %219 = vmatpush2.msra.mxu1 %v155_v29  ;;  %v494_v29 = vld [vmem:[#allocation2 + $0x510] sm:$0xff] }
  0x37   :  { %220 = vmatprep.subr.mxu1 %v1193_v0 }
  0x38   :  { %221 = vmatpush2.msra.mxu1 %v154_v30  ;;  %v492_v30 = vld [vmem:[#allocation2 + $0x500] sm:$0xff] }
  0x39   :  { %222 = vmatprep.subr.mxu1 %v1193_v0 }
  0x3a   :  { %223 = vmatpush2.msra.mxu1 %v153_v31  ;;  %v496_v31 = vld [vmem:[#allocation2 + $0x520] sm:$0xff] }
  0x3b   :  { %224 = vmatprep.subr.mxu1 %v1193_v0 }
  0x3c   :  { %225 = vmatpush2.msra.mxu1 %v152_v32  ;;  %v491_v32 = vld [vmem:[#allocation2 + $0x4f8] sm:$0xff] }
  0x3d   :  { %226 = vmatprep.subr.mxu1 %v1193_v0 }
  0x3e   :  { %227 = vmatpush2.msra.mxu1 %v151_v33  ;;  %v489_v33 = vld [vmem:[#allocation2 + $0x4e8] sm:$0xff] }
  0x3f   :  { %518 = vmatprep.subr.mxu1 %v498_v25 }
  0xd7   :  { %v128_v61 = vpop.f32.mrf.mxu0 }
  0xd8   :  { %v129_v62 = vadd.f32 %v128_v61, %v44_v59  ;;  %v467_v59 = vld [vmem:[#allocation2 + $0x438] sm:$0xff]  ;;  %v469_v61 = vld [vmem:[#allocation2 + $0x448] sm:$0xff] }
  0xd9   :  { %v130_v63 = vpop.f32.mrf.mxu0 }
  0xda   :  { %v131_v1 = vadd.f32 %v130_v63, %v48_v60  ;;  %v133_v3 = vmax.f32 %v129_v62, 0.0  ;;  %v465_v60 = vld [vmem:[#allocation2 + $0x428] sm:$0xff]  ;;  %v464_v62 = vld [vmem:[#allocation2 + $0x420] sm:$0xff]  ;;  %v462_v63 = vld [vmem:[#allocation2 + $0x410] sm:$0xff] }
  0xdc   :  { %v134_v2 = vmax.f32 %v131_v1, 0.0  ;;  %v466_v1 = vld [vmem:[#allocation2 + $0x430] sm:$0xff] }
  0xde   :  { %961 = vmatprep.mubr.msk.f32.mxu1 %vm160_vm2, %v134_v2  ;;  %v461_v2 = vld [vmem:[#allocation2 + $0x408] sm:$0xff] }
  0xdf   :  { %229 = vmatmul.mubr.f32.vlgmr.msra.gmra.mxu1 %v133_v3  ;;  %v459_v3 = vld [vmem:[#allocation2 + $0x3f8] sm:$0xff] }
  0xe0   :  { %582 = vmatprep.mubr.f32.mxu1 %v1193_v0  ;;  %519 = vmatpush1.msra.mxu1 %v497_v26 }
  0xe1   :  { %520 = vmatprep.subr.mxu1 %v495_v27  ;;  %v284_v27 = vsub.s32 2, %v1251_v55  ;;  %v874_v55 = vld [vmem:[#allocation2 + $0x786] ss:$0 sm:$0xff] }
  0xe2   :  { %521 = vmatpush1.msra.mxu1 %v494_v29 }
  0xe3   :  { %522 = vmatprep.subr.mxu1 %v492_v30 }
  0xe4   :  { %523 = vmatpush1.msra.mxu1 %v491_v32 }
  0xe5   :  { %524 = vmatprep.subr.mxu1 %v489_v33 }
  0xe6   :  { %525 = vmatpush1.msra.mxu1 %v488_v35 }
  0xe7   :  { %526 = vmatprep.subr.mxu1 %v486_v36 }
  0xe8   :  { %527 = vmatpush1.msra.mxu1 %v485_v38 }
  0xe9   :  { %528 = vmatprep.subr.mxu1 %v483_v39 }
  0xea   :  { %529 = vmatpush1.msra.mxu1 %v482_v41  ;;  %v690_v41 = vld [vmem:[#allocation2 + $0x638] sm:$0xff] }
  0xeb   :  { %530 = vmatprep.subr.mxu1 %v480_v42  ;;  %v694_v42 = vld [vmem:[#allocation2 + $0x658] sm:$0xff] }
  0xec   :  { %531 = vmatpush1.msra.mxu1 %v479_v44  ;;  %v687_v44 = vld [vmem:[#allocation2 + $0x620] sm:$0xff] }
  0xed   :  { %532 = vmatprep.subr.mxu1 %v477_v45  ;;  %v691_v45 = vld [vmem:[#allocation2 + $0x640] sm:$0xff] }
  0xee   :  { %533 = vmatpush1.msra.mxu1 %v476_v47  ;;  %v684_v47 = vld [vmem:[#allocation2 + $0x608] sm:$0xff] }
  0xef   :  { %534 = vmatprep.subr.mxu1 %v474_v48  ;;  %v688_v48 = vld [vmem:[#allocation2 + $0x628] sm:$0xff] }
  0xf0   :  { %535 = vmatpush1.msra.mxu1 %v473_v50  ;;  %v681_v50 = vld [vmem:[#allocation2 + $0x5f0] sm:$0xff] }
  0xf1   :  { %536 = vmatprep.subr.mxu1 %v471_v51  ;;  %v685_v51 = vld [vmem:[#allocation2 + $0x610] sm:$0xff] }
  0xf2   :  { %537 = vmatpush1.msra.mxu1 %v470_v53  ;;  %v678_v53 = vld [vmem:[#allocation2 + $0x5d8] sm:$0xff] }
  0xf3   :  { %538 = vmatprep.subr.mxu1 %v468_v54  ;;  %v682_v54 = vld [vmem:[#allocation2 + $0x5f8] sm:$0xff] }
  0xf4   :  { %539 = vmatpush1.msra.mxu1 %v467_v59  ;;  %v675_v59 = vld [vmem:[#allocation2 + $0x5c0] sm:$0xff] }
  0xf5   :  { %540 = vmatprep.subr.mxu1 %v465_v60  ;;  %v679_v60 = vld [vmem:[#allocation2 + $0x5e0] sm:$0xff] }
  0xf6   :  { %541 = vmatpush1.msra.mxu1 %v464_v62  ;;  %v672_v62 = vld [vmem:[#allocation2 + $0x5a8] sm:$0xff] }
  0xf7   :  { %542 = vmatprep.subr.mxu1 %v462_v63  ;;  %v676_v63 = vld [vmem:[#allocation2 + $0x5c8] sm:$0xff] }
  0xf8   :  { %543 = vmatpush1.msra.mxu1 %v461_v2  ;;  %v669_v2 = vld [vmem:[#allocation2 + $0x590] sm:$0xff] }
  0xf9   :  { %544 = vmatprep.subr.mxu1 %v459_v3  ;;  %v673_v3 = vld [vmem:[#allocation2 + $0x5b0] sm:$0xff] }
  0xfa   :  { %545 = vmatpush1.msra.mxu1 %v458_v5  ;;  %v666_v5 = vld [vmem:[#allocation2 + $0x578] sm:$0xff] }
  0xfb   :  { %546 = vmatprep.subr.mxu1 %v456_v6  ;;  %v670_v6 = vld [vmem:[#allocation2 + $0x598] sm:$0xff] }
 0x19f   :  { %v230_v9 = vpop.f32.mrf.mxu1 }
 0x1a0   :  { %v231_v10 = vadd.f32 %v230_v9, %v159_v8  ;;  %v455_v8 = vld [vmem:[#allocation2 + $0x3d8] sm:$0xff]  ;;  %v453_v9 = vld [vmem:[#allocation2 + $0x3c8] sm:$0xff] }
 0x1a1   :  { %v232_v11 = vpop.f32.mrf.mxu1  ;;  %547 = vmatpush1.msra.mxu1 %v455_v8  ;;  %v663_v8 = vld [vmem:[#allocation2 + $0x560] sm:$0xff] }
 0x1a2   :  { %v234_v12 = vmax.f32 %v231_v10, 0.0  ;;  %v457_v10 = vld [vmem:[#allocation2 + $0x3e8] sm:$0xff]  ;;  %v452_v11 = vld [vmem:[#allocation2 + $0x3c0] sm:$0xff]  ;;  %548 = vmatprep.subr.mxu1 %v453_v9 }
 0x1a3   :  { %549 = vmatpush1.msra.mxu1 %v452_v11  ;;  %v667_v9 = vld [vmem:[#allocation2 + $0x580] sm:$0xff]  ;;  %v660_v11 = vld [vmem:[#allocation2 + $0x548] sm:$0xff] }
 0x1a4   :  { %962 = vmatmul.mubr.msk.f32.vlgmr.msra.gmra.mxu0 %vm289_vm3, %v234_v12 }
 0x1a5   :  { %1028 = vmatpush3.msra.mxu0 %v270_v13  ;;  %1051 = vmatprep.mubr.msk.f32.mxu0 %vm1194_vm4, %v1193_v0  ;;  %v693_v13 = vld [vmem:[#allocation2 + $0x650] sm:$0xff] }
 0x1a6   :  { %1029 = vmatprep.subr.mxu0 %v1193_v0  ;;  %706 = vmatprep.subr.mxu1 %v693_v13  ;;  %v659_v13 = vld [vmem:[#allocation2 + $0x540] sm:$0xff] }
 0x1a7   :  { %1030 = vmatpush3.msra.mxu0 %v267_v14  ;;  %v272_v14 = vld [vmem:[#allocation2 + $0x782] ss:$8 sm:$0x7] }
 0x1a8   :  { %1031 = vmatprep.subr.mxu0 %v1193_v0  ;;  %v285_v30 = vrot.slane %v272_v14, %v284_v27 }
 0x1a9   :  { %1032 = vmatpush3.msra.mxu0 %v264_v15  ;;  %v277_v15 = vrot.slane %v272_v14, %v1254_v56 }
 0x1aa   :  { %1033 = vmatprep.subr.mxu0 %v1193_v0 }
 0x1ab   :  { %1034 = vmatpush3.msra.mxu0 %v261_v16 }
 0x1ac   :  { %1035 = vmatprep.subr.mxu0 %v1193_v0 }
 0x1ad   :  { %1036 = vmatpush3.msra.mxu0 %v258_v17 }
 0x1ae   :  { %1037 = vmatprep.subr.mxu0 %v1193_v0 }
 0x1af   :  { %1038 = vmatpush3.msra.mxu0 %v255_v18 }
 0x1b0   :  { %1039 = vmatprep.subr.mxu0 %v1193_v0 }
 0x1b1   :  { %1040 = vmatpush3.msra.mxu0 %v252_v19  ;;  %v281_v19 = vrot.slane %v272_v14, %v1257_v58  ;;  %v1315_v14 = vld [vmem:[%s1352_s1] sm:$0x3] }
 0x1b2   :  { %1041 = vmatprep.subr.mxu0 %v1193_v0 }
 0x1b3   :  { %1042 = vmatpush3.msra.mxu0 %v249_v20 }
 0x1b4   :  { %1043 = vmatprep.subr.mxu0 %v1193_v0 }
 0x1b5   :  { %1044 = vmatpush3.msra.mxu0 %v246_v21 }
 0x1b6   :  { %1045 = vmatprep.subr.mxu0 %v1193_v0 }
 0x1b7   :  { %1046 = vmatpush3.msra.mxu0 %v243_v22 }
 0x1b8   :  { %1047 = vmatprep.subr.mxu0 %v1193_v0 }
 0x1b9   :  { %1048 = vmatpush3.msra.mxu0 %v240_v23 }
 0x1ba   :  { %1049 = vmatprep.subr.mxu0 %v1193_v0 }
 0x1bb   :  { %1050 = vmatpush3.msra.mxu0 %v237_v24 }
 0x1bc   :  { %1052 = vmatmul.mubr.msk.f32.vlgmr.msra.gmra.mxu0 %vm289_vm3, %v234_v12  ;;  %1054 = vmatprep.subr.mxu0 %v1193_v0  ;;  %v454_v12 = vld [vmem:[#allocation2 + $0x3d0] sm:$0xff] }
 0x1bd   :  { %1086 = vmatprep.mubr.msk.f32.mxu0 %vm1194_vm4, %v1193_v0  ;;  %1055 = vmatpush3.msra.mxu0 %v499_v28 }
 0x1be   :  { %1056 = vmatprep.subr.mxu0 %v1193_v0 }
 0x1bf   :  { %1057 = vmatpush3.msra.mxu0 %v496_v31  ;;  %v446_v31 = vld [vmem:[#allocation2 + $0x783] ss:$0 sm:$0xff] }
 0x1c0   :  { %1058 = vmatprep.subr.mxu0 %v1193_v0 }
 0x1c1   :  { %1059 = vmatpush3.msra.mxu0 %v493_v34 }
 0x1c2   :  { %1060 = vmatprep.subr.mxu0 %v1193_v0 }
 0x1c3   :  { %1061 = vmatpush3.msra.mxu0 %v490_v37 }
 0x1c4   :  { %1062 = vmatprep.subr.mxu0 %v1193_v0 }
 0x1c5   :  { %1063 = vmatpush3.msra.mxu0 %v487_v40  ;;  %v692_v40 = vld [vmem:[#allocation2 + $0x648] sm:$0xff] }
 0x1c6   :  { %1064 = vmatprep.subr.mxu0 %v1193_v0 }
 0x1c7   :  { %1065 = vmatpush3.msra.mxu0 %v484_v43  ;;  %v689_v43 = vld [vmem:[#allocation2 + $0x630] sm:$0xff] }
 0x1c8   :  { %1066 = vmatprep.subr.mxu0 %v1193_v0 }
 0x1c9   :  { %1067 = vmatpush3.msra.mxu0 %v481_v46  ;;  %v686_v46 = vld [vmem:[#allocation2 + $0x618] sm:$0xff] }
 0x1ca   :  { %1068 = vmatprep.subr.mxu0 %v1193_v0 }
 0x1cb   :  { %1069 = vmatpush3.msra.mxu0 %v478_v49  ;;  %v683_v49 = vld [vmem:[#allocation2 + $0x600] sm:$0xff] }
 0x1cc   :  { %1070 = vmatprep.subr.mxu0 %v1193_v0 }
 0x1cd   :  { %1071 = vmatpush3.msra.mxu0 %v475_v52  ;;  %v680_v52 = vld [vmem:[#allocation2 + $0x5e8] sm:$0xff] }
 0x1ce   :  { %1072 = vmatprep.subr.mxu0 %v1193_v0 }
 0x1cf   :  { %1073 = vmatpush3.msra.mxu0 %v472_v57  ;;  %v677_v57 = vld [vmem:[#allocation2 + $0x5d0] sm:$0xff] }
 0x1d0   :  { %1074 = vmatprep.subr.mxu0 %v1193_v0 }
 0x1d1   :  { %1075 = vmatpush3.msra.mxu0 %v469_v61  ;;  %v674_v61 = vld [vmem:[#allocation2 + $0x5b8] sm:$0xff] }
 0x1d2   :  { %1076 = vmatprep.subr.mxu0 %v1193_v0 }
 0x1d3   :  { %1077 = vmatpush3.msra.mxu0 %v466_v1  ;;  %v671_v1 = vld [vmem:[#allocation2 + $0x5a0] sm:$0xff] }
 0x1d4   :  { %1078 = vmatprep.subr.mxu0 %v1193_v0 }
 0x1d5   :  { %1079 = vmatpush3.msra.mxu0 %v463_v4  ;;  %v668_v4 = vld [vmem:[#allocation2 + $0x588] sm:$0xff] }
 0x1d6   :  { %1080 = vmatprep.subr.mxu0 %v1193_v0 }
 0x1d7   :  { %1081 = vmatpush3.msra.mxu0 %v460_v7  ;;  %v665_v7 = vld [vmem:[#allocation2 + $0x570] sm:$0xff] }
 0x1d8   :  { %1082 = vmatprep.subr.mxu0 %v1193_v0 }
 0x1d9   :  { %1083 = vmatpush3.msra.mxu0 %v457_v10  ;;  %v662_v10 = vld [vmem:[#allocation2 + $0x558] sm:$0xff] }
 0x1da   :  { %1084 = vmatprep.subr.mxu0 %v1193_v0 }
 0x1db   :  { %1085 = vmatpush3.msra.mxu0 %v454_v12  ;;  %v664_v12 = vld [vmem:[#allocation2 + $0x568] sm:$0xff] }
 0x1dc   :  { %1089 = vmatprep.subr.mxu0 %v1193_v0 }
 0x264   :  { %v359_v16 = vpop.f32.mrf.mxu0 }
 0x265   :  { %v360_v17 = vadd.f32 %v359_v16, %v277_v15  ;;  %v661_v15 = vld [vmem:[#allocation2 + $0x550] sm:$0xff]  ;;  %v873_v16 = vld [vmem:[#allocation2 + $0x768] sm:$0xff] }
 0x266   :  { %v361_v20 = vpop.f32.mrf.mxu0 }
 0x267   :  { %v964_v18 = vmul.f32 -1.442695, %v360_v17  ;;  %v362_v21 = vadd.f32 %v361_v20, %v281_v19  ;;  %v872_v17 = vld [vmem:[#allocation2 + $0x750] sm:$0xff]  ;;  %v870_v19 = vld [vmem:[#allocation2 + $0x720] sm:$0xff]  ;;  %v869_v20 = vld [vmem:[#allocation2 + $0x708] sm:$0xff] }
 0x269   :  { %1148 = vpow2.f32 %v964_v18  ;;  %v965_v22 = vmul.f32 -1.442695, %v362_v21  ;;  %v871_v18 = vld [vmem:[#allocation2 + $0x738] sm:$0xff]  ;;  %v868_v21 = vld [vmem:[#allocation2 + $0x6f0] sm:$0xff] }
 0x26b   :  { %1150 = vpow2.f32 %v965_v22  ;;  %v867_v22 = vld [vmem:[#allocation2 + $0x6d8] sm:$0xff] }
 0x276   :  { %v1149_v23 = vpop.eup %1148 }
 0x277   :  { %v437_v24 = vadd.f32 1.0, %v1149_v23  ;;  %v866_v23 = vld [vmem:[#allocation2 + $0x6c0] sm:$0xff] }
 0x278   :  { %v1151_v28 = vpop.eup %1150 }
 0x279   :  { %1152 = vrcp.f32 %v437_v24  ;;  %v443_v29 = vadd.f32 1.0, %v1151_v28  ;;  %v865_v24 = vld [vmem:[#allocation2 + $0x6a8] sm:$0xff]  ;;  %v862_v28 = vld [vmem:[#allocation2 + $0x660] sm:$0xff] }
 0x27b   :  { %1154 = vrcp.f32 %v443_v29 }
 0x27c   :  { %v430_v25 = vpop.f32.mrf.mxu0 }
 0x27d   :  { %v431_v33 = vadd.f32 %v430_v25, %v285_v30  ;;  %v864_v25 = vld [vmem:[#allocation2 + $0x690] sm:$0xff] }
 0x27e   :  { %v1053_v26 = vpop.f32.mrf.mxu0 }
 0x27f   :  { %v863_v26 = vld [vmem:[#allocation2 + $0x678] sm:$0xff] }
 0x286   :  { %v1153_v32 = vpop.eup %1152 }
 0x287   :  { %v447_v34 = vmul.f32 %v1153_v32, %v446_v31  ;;  %v501_v31 = vld [vmem:[#allocation2 + $0x784] ss:$8 sm:$0x7] }
 0x288   :  { %v1155_v36 = vpop.eup %1154 }
 0x289   :  { %v448_v35 = vadd.f32 %v447_v34, %v431_v33  ;;  %v450_v37 = vsub.f32 1.0, %v1155_v36  ;;  %v506_v33 = vrot.slane %v501_v31, %v1254_v56  ;;  %v853_v56 = vld [vmem:[#allocation2 + $0x785] ss:$0 sm:$0xff] }
 0x28b   :  { %1156 = vtanh.f32 %v448_v35 }
 0x298   :  { %v1157_v38 = vpop.eup %1156 }
 0x299   :  { %v451_v39 = vmul.f32 %v1157_v38, %v450_v37  ;;  %v510_v37 = vrot.slane %v501_v31, %v1257_v58 }
 0x29b   :  { %583 = vmatmul.mubr.f32.vlgmr.msra.gmra.mxu1 %v451_v39  ;;  %1087 = vmatmul.mubr.f32.vlgmr.msra.gmra.mxu0 %v451_v39 }
 0x29c   :  { %707 = vmatpush1.msra.mxu1 %v692_v40  ;;  %762 = vmatprep.mubr.f32.mxu1 %v1193_v0 }
 0x29d   :  { %708 = vmatprep.subr.mxu1 %v690_v41  ;;  %1090 = vmatpush3.msra.mxu0 %v694_v42 }
 0x29e   :  { %709 = vmatpush1.msra.mxu1 %v689_v43  ;;  %1091 = vmatprep.subr.mxu0 %v1193_v0 }
 0x29f   :  { %710 = vmatprep.subr.mxu1 %v687_v44  ;;  %1092 = vmatpush3.msra.mxu0 %v691_v45 }
 0x2a0   :  { %711 = vmatpush1.msra.mxu1 %v686_v46  ;;  %1093 = vmatprep.subr.mxu0 %v1193_v0 }
 0x2a1   :  { %712 = vmatprep.subr.mxu1 %v684_v47  ;;  %1094 = vmatpush3.msra.mxu0 %v688_v48  ;;  %v514_v48 = vrot.slane %v501_v31, %v284_v27 }
 0x2a2   :  { %713 = vmatpush1.msra.mxu1 %v683_v49  ;;  %1095 = vmatprep.subr.mxu0 %v1193_v0 }
 0x2a3   :  { %714 = vmatprep.subr.mxu1 %v681_v50  ;;  %1096 = vmatpush3.msra.mxu0 %v685_v51 }
 0x2a4   :  { %715 = vmatpush1.msra.mxu1 %v680_v52  ;;  %1097 = vmatprep.subr.mxu0 %v1193_v0 }
 0x2a5   :  { %716 = vmatprep.subr.mxu1 %v678_v53  ;;  %1098 = vmatpush3.msra.mxu0 %v682_v54 }
 0x2a6   :  { %717 = vmatpush1.msra.mxu1 %v677_v57  ;;  %1099 = vmatprep.subr.mxu0 %v1193_v0 }
 0x2a7   :  { %718 = vmatprep.subr.mxu1 %v675_v59  ;;  %1100 = vmatpush3.msra.mxu0 %v679_v60 }
 0x2a8   :  { %719 = vmatpush1.msra.mxu1 %v674_v61  ;;  %1101 = vmatprep.subr.mxu0 %v1193_v0 }
 0x2a9   :  { %720 = vmatprep.subr.mxu1 %v672_v62  ;;  %1102 = vmatpush3.msra.mxu0 %v676_v63 }
 0x2aa   :  { %721 = vmatpush1.msra.mxu1 %v671_v1  ;;  %1103 = vmatprep.subr.mxu0 %v1193_v0 }
 0x2ab   :  { %722 = vmatprep.subr.mxu1 %v669_v2  ;;  %1104 = vmatpush3.msra.mxu0 %v673_v3 }
 0x2ac   :  { %723 = vmatpush1.msra.mxu1 %v668_v4  ;;  %1105 = vmatprep.subr.mxu0 %v1193_v0 }
 0x2ad   :  { %724 = vmatprep.subr.mxu1 %v666_v5  ;;  %1106 = vmatpush3.msra.mxu0 %v670_v6 }
 0x2ae   :  { %725 = vmatpush1.msra.mxu1 %v665_v7  ;;  %1107 = vmatprep.subr.mxu0 %v1193_v0 }
 0x2af   :  { %726 = vmatprep.subr.mxu1 %v663_v8  ;;  %1108 = vmatpush3.msra.mxu0 %v667_v9 }
 0x2b0   :  { %727 = vmatpush1.msra.mxu1 %v662_v10  ;;  %1109 = vmatprep.subr.mxu0 %v1193_v0 }
 0x2b1   :  { %728 = vmatprep.subr.mxu1 %v660_v11  ;;  %1110 = vmatpush3.msra.mxu0 %v664_v12 }
 0x2b2   :  { %729 = vmatpush1.msra.mxu1 %v659_v13  ;;  %1111 = vmatprep.subr.mxu0 %v1193_v0 }
 0x2b3   :  { %966 = vmatmul.mubr.msk.f32.vlgmr.msra.gmra.mxu1 %vm289_vm3, %v1315_v14  ;;  %1112 = vmatpush3.msra.mxu0 %v661_v15 }
 0x2b4   :  { %1113 = vmatprep.mubr.msk.f32.mxu0 %vm1194_vm4, %v1193_v0  ;;  %1116 = vmatprep.subr.mxu1 %v1193_v0 }
 0x2b5   :  { %1114 = vmatmul.mubr.msk.f32.vlgmr.msra.gmra.mxu0 %vm289_vm3, %v1315_v14  ;;  %1140 = vmatprep.mubr.msk.f32.mxu1 %vm1194_vm4, %v1193_v0 }
 0x2b6   :  { %1117 = vmatpush3.msra.mxu1 %v873_v16 }
 0x2b7   :  { %1118 = vmatprep.subr.mxu1 %v1193_v0 }
 0x2b8   :  { %1119 = vmatpush3.msra.mxu1 %v872_v17 }
 0x2b9   :  { %1120 = vmatprep.subr.mxu1 %v1193_v0 }
 0x2ba   :  { %1121 = vmatpush3.msra.mxu1 %v871_v18 }
 0x2bb   :  { %1122 = vmatprep.subr.mxu1 %v1193_v0 }
 0x2bc   :  { %1123 = vmatpush3.msra.mxu1 %v870_v19 }
 0x2bd   :  { %1124 = vmatprep.subr.mxu1 %v1193_v0 }
 0x2be   :  { %1125 = vmatpush3.msra.mxu1 %v869_v20 }
 0x2bf   :  { %1126 = vmatprep.subr.mxu1 %v1193_v0 }
 0x2c0   :  { %1127 = vmatpush3.msra.mxu1 %v868_v21 }
 0x2c1   :  { %1128 = vmatprep.subr.mxu1 %v1193_v0 }
 0x2c2   :  { %1129 = vmatpush3.msra.mxu1 %v867_v22 }
 0x2c3   :  { %1130 = vmatprep.subr.mxu1 %v1193_v0 }
 0x2c4   :  { %1131 = vmatpush3.msra.mxu1 %v866_v23 }
 0x2c5   :  { %1132 = vmatprep.subr.mxu1 %v1193_v0 }
 0x2c6   :  { %1133 = vmatpush3.msra.mxu1 %v865_v24 }
 0x2c7   :  { %1134 = vmatprep.subr.mxu1 %v1193_v0 }
 0x2c8   :  { %1135 = vmatpush3.msra.mxu1 %v864_v25 }
 0x2c9   :  { %1136 = vmatprep.subr.mxu1 %v1193_v0 }
 0x2ca   :  { %1137 = vmatpush3.msra.mxu1 %v863_v26 }
 0x2cb   :  { %1138 = vmatprep.subr.mxu1 %v1193_v0 }
 0x2cc   :  { %1139 = vmatpush3.msra.mxu1 %v862_v28 }
 0x35b   :  { %v655_v29 = vpop.f32.mrf.mxu0  ;;  %v584_v32 = vpop.f32.mrf.mxu1 }
 0x35c   :  { %v585_v35 = vadd.f32 %v584_v32, %v506_v33  ;;  %v656_v51 = vadd.f32 %v655_v29, %v514_v48 }
 0x35d   :  { %v1088_v30 = vpop.f32.mrf.mxu0  ;;  %v586_v34 = vpop.f32.mrf.mxu1 }
 0x35e   :  { %v587_v43 = vadd.f32 %v586_v34, %v510_v37 }
 0x373   :  { %v764_v36 = vpop.f32.mrf.mxu1 }
 0x374   :  { %v839_v38 = vadd.f32 %v764_v36, %v585_v35 }
 0x375   :  { %v835_v39 = vpop.f32.mrf.mxu0  ;;  %v766_v41 = vpop.f32.mrf.mxu1 }
 0x376   :  { %v968_v40 = vmul.f32 -1.442695, %v839_v38  ;;  %v846_v0 = vadd.f32 %v766_v41, %v587_v43  ;;  %v854_v58 = vadd.f32 %v853_v56, %v835_v39 }
 0x377   :  { %v1115_v42 = vpop.f32.mrf.mxu0 }
 0x378   :  { %1158 = vpow2.f32 %v968_v40  ;;  %v969_v44 = vmul.f32 -1.442695, %v846_v0 }
 0x37a   :  { %1160 = vpow2.f32 %v969_v44 }
 0x385   :  { %v1159_v45 = vpop.eup %1158 }
 0x386   :  { %v843_v46 = vadd.f32 1.0, %v1159_v45 }
 0x387   :  { %v1161_v47 = vpop.eup %1160 }
 0x388   :  { %1162 = vrcp.f32 %v843_v46  ;;  %v850_v49 = vadd.f32 1.0, %v1161_v47 }
 0x38a   :  { %1164 = vrcp.f32 %v850_v49 }
 0x395   :  { %v1163_v50 = vpop.eup %1162 }
 0x396   :  { %v855_v52 = vmul.f32 %v1163_v50, %v854_v58 }
 0x397   :  { %v1165_v54 = vpop.eup %1164 }
 0x398   :  { %v856_v53 = vadd.f32 %v855_v52, %v656_v51  ;;  %v858_v57 = vsub.f32 1.0, %v1165_v54  ;;  %v860_v61 = vmul.f32 %v1165_v54, %v1315_v14 }
 0x39a   :  { %1166 = vtanh.f32 %v856_v53 }
 0x3a7   :  { %v1167_v59 = vpop.eup %1166 }
 0x3a8   :  { %v859_v60 = vmul.f32 %v1167_v59, %v858_v57 }
 0x3aa   :  { %v861_v62 = vadd.f32 %v860_v61, %v859_v60 }
 0x3ac   :  { %1141 = vmatmul.mubr.msk.f32.vlgmr.msra.gmra.mxu1 %vm289_vm3, %v861_v62  ;;  %950 = vst.msk [vmem:[%s1354_s3] sm:$0x3] %vm949_vm5, %v861_v62 }
 0x46c   :  { %v944_v27 = vpop.f32.mrf.mxu1 }
 0x46d   :  { %v945_v63 = vadd.f32 %v944_v27, %v874_v55 }
 0x46e   :  { %v1142_v1 = vpop.f32.mrf.mxu1 }
 0x46f   :  { %952 = vst.msk [vmem:[%s1354_s3 + $0x2] sm:$0x3] %vm951_vm6, %v945_v63 }
 0x470   :  { %957 = vsyncpa [#allocation3], 1 }

</bundles_post_ra>
